<compile_context>
chip_gen: v5e
topology: v5e:2x2
jax: 0.10.0
libtpu: 0.0.40
codegen_flags: <defaults>
</compile_context>

<pallas_src>
import math

import jax
import jax.numpy as jnp
from jax.experimental import pallas as pl
from jax.experimental.pallas import tpu as pltpu

Q_LEVEL = 6                 # self.T in the module
THETA = 1.0 - 0.0001        # spike threshold used by create_spike_input_cuda

_DEFAULT_BLOCK_S = 1024     # sublane-rows of 128 lanes per block: 6*1024*128*4B = 3 MiB/tile


def _new_spike_kernel(x_ref, o_ref):
    """x_ref, o_ref: (T, block_s, 128) tiles in VMEM."""
    T = x_ref.shape[0]
    # Step 1: temporal average.  Accumulate slab-by-slab (each slab is a fully
    # dense (block_s, 128) set of vregs) and multiply by 1/T (no divide).
    v = x_ref[0].astype(jnp.float32)
    for t in range(1, T):                      # T is tiny (6), static -> unrolled
        v = v + x_ref[t].astype(jnp.float32)
    v = v * jnp.float32(1.0 / T)
    # Steps 2+3: integrate-and-fire with soft reset; one dense store per step
    # (direct per-row stores, no concatenate temporary).
    theta = jnp.float32(THETA)
    u = jnp.zeros_like(v)
    for t in range(T):
        u = u + v
        spike = (u >= theta).astype(jnp.float32)
        u = u - spike * theta
        o_ref[t] = spike.astype(o_ref.dtype)


def _new_spike_time_major(x3, *, block_s=_DEFAULT_BLOCK_S, out_dtype=jnp.float32):
    """Core pallas_call on a time-major (T, M//128, 128) slab (no relayout)."""
    T, m128, lanes = x3.shape
    assert lanes == 128 and m128 % 8 == 0
    block_s = max(8, (min(block_s, m128) // 8) * 8)
    grid = (pl.cdiv(m128, block_s),)           # ragged last block handled by Pallas

    elems = T * m128 * 128
    cost = pl.CostEstimate(
        flops=7 * elems,
        transcendentals=0,
        bytes_accessed=elems * (x3.dtype.itemsize + jnp.dtype(out_dtype).itemsize),
    )
    return pl.pallas_call(
        _new_spike_kernel,
        out_shape=jax.ShapeDtypeStruct((T, m128, 128), out_dtype),
        grid_spec=pltpu.PrefetchScalarGridSpec(
            num_scalar_prefetch=0,
            grid=grid,
            in_specs=[pl.BlockSpec((T, block_s, 128), lambda i: (0, i, 0))],
            out_specs=pl.BlockSpec((T, block_s, 128), lambda i: (0, i, 0)),
        ),
        compiler_params=pltpu.CompilerParams(
            dimension_semantics=("parallel",),
            vmem_limit_bytes=32 * 1024 * 1024,
        ),
        cost_estimate=cost,
    )(x3)


def new_spike(x, T=Q_LEVEL, *, block_s=_DEFAULT_BLOCK_S, out_dtype=jnp.float32):
    """x: (N, C, H, W, T) array -> (N, C, H, W, T) float spike train."""
    assert x.shape[-1] == T, "last axis must be the time axis of length T"
    lead = x.shape[:-1]
    M = math.prod(lead)

    # Time-major relayout (.., T) -> (T, M).  Kept as one XLA transpose; a
    # consumer that already has time-major data should call
    # _new_spike_time_major directly and skip both relayouts.
    # TODO(synk): fuse this relayout (and the inverse) into the kernel via
    # memory_space=pl.ANY + manual DMA to drop the two extra HBM passes.
    xt = jnp.moveaxis(x, -1, 0).reshape(T, M)

    # Pad the flattened axis to a multiple of 1024 (= 8 sublanes * 128 lanes)
    # only when needed; typical conv feature maps need no pad/slice pass.
    Mp = M if M % 1024 == 0 else (M // 1024 + 1) * 1024
    if Mp != M:
        xt = jnp.pad(xt, ((0, 0), (0, Mp - M)))

    out = _new_spike_time_major(
        xt.reshape(T, Mp // 128, 128), block_s=block_s, out_dtype=out_dtype
    ).reshape(T, Mp)
    if Mp != M:
        out = out[:, :M]
    return jnp.moveaxis(out.reshape((T,) + lead), 0, -1)


def _reference_new_spike(x, T=Q_LEVEL):
    """Pure-JAX reference mirroring torch.sum(...)/T + catCuda.getSpikes."""
    v = jnp.sum(x.astype(jnp.float32), axis=-1) / T
    u = jnp.zeros_like(v)
    spikes = []
    for _ in range(T):
        u = u + v
        s = (u >= THETA).astype(jnp.float32)
        u = u - s * THETA
        spikes.append(s)
    return jnp.stack(spikes, axis=-1)


def _check(y, y_ref):
    # Spikes are exactly {0, 1}; allow a tiny fraction of near-threshold flips
    # caused by 1-ulp differences in reduction order / reciprocal-multiply.
    assert bool(jnp.all((y == 0.0) | (y == 1.0))), "non-binary spike values"
    mismatch = float(jnp.mean((jnp.abs(y - y_ref) > 0.5).astype(jnp.float32)))
    assert mismatch < 1e-3, f"spike mismatch fraction {mismatch}"


if __name__ == "__main__":
    key = jax.random.PRNGKey(0)
    k1, k2 = jax.random.split(key)

    # Small shape consistent with a conv feature map + time axis: (N, C, H, W, T)
    x = jax.random.uniform(k1, (2, 4, 16, 16, Q_LEVEL), dtype=jnp.float32)
    y = jax.block_until_ready(new_spike(x))
    assert y.shape == x.shape and y.dtype == jnp.float32
    _check(y, _reference_new_spike(x))

    # Second shape exercises the pad path, multiple grid blocks and a ragged
    # last block (M = 2*6*40*40 is not a multiple of 1024; block_s forced small).
    x2 = 1.5 * jax.random.uniform(k2, (2, 6, 40, 40, Q_LEVEL), dtype=jnp.float32)
    y2 = jax.block_until_ready(new_spike(x2, block_s=16))
    assert y2.shape == x2.shape
    _check(y2, _reference_new_spike(x2))

    print("KERNEL_OK")
</pallas_src>

<mosaic_0001>
module attributes {stable_mosaic.version = 11 : i64} {
  func.func @_new_spike_kernel(%arg0: i32, %arg1: memref<6x16x128xf32, #tpu.memory_space<vmem>>, %arg2: memref<6x16x128xf32, #tpu.memory_space<vmem>>) attributes {dimension_semantics = [#tpu.dimension_semantics<parallel>], iteration_bounds = array<i64: 1>, scalar_prefetch = 0 : i64, scratch_operands = 0 : i64, tpu.core_type = #tpu.core_type<tc>, window_params = [{transform_indices = @transform_0, window_bounds = array<i64: 6, 16, 128>}, {transform_indices = @transform_1, window_bounds = array<i64: 6, 16, 128>}]} {
    %c0 = arith.constant 0 : index
    %c0_0 = arith.constant 0 : index
    %c0_1 = arith.constant 0 : index
    %0 = vector.load %arg1[%c0, %c0_0, %c0_1] : memref<6x16x128xf32, #tpu.memory_space<vmem>>, vector<1x16x128xf32>
    %1 = vector.shape_cast %0 : vector<1x16x128xf32> to vector<16x128xf32>
    %c1 = arith.constant 1 : index
    %c0_2 = arith.constant 0 : index
    %c0_3 = arith.constant 0 : index
    %2 = vector.load %arg1[%c1, %c0_2, %c0_3] : memref<6x16x128xf32, #tpu.memory_space<vmem>>, vector<1x16x128xf32>
    %3 = vector.shape_cast %2 : vector<1x16x128xf32> to vector<16x128xf32>
    %4 = arith.addf %1, %3 : vector<16x128xf32>
    %c2 = arith.constant 2 : index
    %c0_4 = arith.constant 0 : index
    %c0_5 = arith.constant 0 : index
    %5 = vector.load %arg1[%c2, %c0_4, %c0_5] : memref<6x16x128xf32, #tpu.memory_space<vmem>>, vector<1x16x128xf32>
    %6 = vector.shape_cast %5 : vector<1x16x128xf32> to vector<16x128xf32>
    %7 = arith.addf %4, %6 : vector<16x128xf32>
    %c3 = arith.constant 3 : index
    %c0_6 = arith.constant 0 : index
    %c0_7 = arith.constant 0 : index
    %8 = vector.load %arg1[%c3, %c0_6, %c0_7] : memref<6x16x128xf32, #tpu.memory_space<vmem>>, vector<1x16x128xf32>
    %9 = vector.shape_cast %8 : vector<1x16x128xf32> to vector<16x128xf32>
    %10 = arith.addf %7, %9 : vector<16x128xf32>
    %c4 = arith.constant 4 : index
    %c0_8 = arith.constant 0 : index
    %c0_9 = arith.constant 0 : index
    %11 = vector.load %arg1[%c4, %c0_8, %c0_9] : memref<6x16x128xf32, #tpu.memory_space<vmem>>, vector<1x16x128xf32>
    %12 = vector.shape_cast %11 : vector<1x16x128xf32> to vector<16x128xf32>
    %13 = arith.addf %10, %12 : vector<16x128xf32>
    %c5 = arith.constant 5 : index
    %c0_10 = arith.constant 0 : index
    %c0_11 = arith.constant 0 : index
    %14 = vector.load %arg1[%c5, %c0_10, %c0_11] : memref<6x16x128xf32, #tpu.memory_space<vmem>>, vector<1x16x128xf32>
    %15 = vector.shape_cast %14 : vector<1x16x128xf32> to vector<16x128xf32>
    %16 = arith.addf %13, %15 : vector<16x128xf32>
    %cst = arith.constant 0.166666672 : f32
    %17 = vector.broadcast %cst : f32 to vector<16x128xf32>
    %18 = arith.mulf %16, %17 : vector<16x128xf32>
    %cst_12 = arith.constant 0.000000e+00 : f32
    %19 = vector.broadcast %cst_12 : f32 to vector<16x128xf32>
    %20 = arith.addf %19, %18 : vector<16x128xf32>
    %cst_13 = arith.constant 0.999899983 : f32
    %21 = vector.broadcast %cst_13 : f32 to vector<16x128xf32>
    %22 = arith.cmpf oge, %20, %21 : vector<16x128xf32>
    %23 = arith.extui %22 : vector<16x128xi1> to vector<16x128xi32>
    %24 = arith.sitofp %23 : vector<16x128xi32> to vector<16x128xf32>
    %cst_14 = arith.constant 0.999899983 : f32
    %25 = vector.broadcast %cst_14 : f32 to vector<16x128xf32>
    %26 = arith.mulf %24, %25 : vector<16x128xf32>
    %27 = arith.subf %20, %26 : vector<16x128xf32>
    %c0_15 = arith.constant 0 : index
    %c0_16 = arith.constant 0 : index
    %c0_17 = arith.constant 0 : index
    %28 = vector.load %arg2[%c0_15, %c0_16, %c0_17] : memref<6x16x128xf32, #tpu.memory_space<vmem>>, vector<1x16x128xf32>
    %29 = vector.shape_cast %28 : vector<1x16x128xf32> to vector<16x128xf32>
    %30 = vector.shape_cast %24 : vector<16x128xf32> to vector<1x16x128xf32>
    tpu.vector_store %arg2[%c0_15, %c0_16, %c0_17], %30 {strides = array<i32>} : memref<6x16x128xf32, #tpu.memory_space<vmem>>, vector<1x16x128xf32>,
    %31 = arith.addf %27, %18 : vector<16x128xf32>
    %cst_18 = arith.constant 0.999899983 : f32
    %32 = vector.broadcast %cst_18 : f32 to vector<16x128xf32>
    %33 = arith.cmpf oge, %31, %32 : vector<16x128xf32>
    %34 = arith.extui %33 : vector<16x128xi1> to vector<16x128xi32>
    %35 = arith.sitofp %34 : vector<16x128xi32> to vector<16x128xf32>
    %cst_19 = arith.constant 0.999899983 : f32
    %36 = vector.broadcast %cst_19 : f32 to vector<16x128xf32>
    %37 = arith.mulf %35, %36 : vector<16x128xf32>
    %38 = arith.subf %31, %37 : vector<16x128xf32>
    %c1_20 = arith.constant 1 : index
    %c0_21 = arith.constant 0 : index
    %c0_22 = arith.constant 0 : index
    %39 = vector.load %arg2[%c1_20, %c0_21, %c0_22] : memref<6x16x128xf32, #tpu.memory_space<vmem>>, vector<1x16x128xf32>
    %40 = vector.shape_cast %39 : vector<1x16x128xf32> to vector<16x128xf32>
    %41 = vector.shape_cast %35 : vector<16x128xf32> to vector<1x16x128xf32>
    tpu.vector_store %arg2[%c1_20, %c0_21, %c0_22], %41 {strides = array<i32>} : memref<6x16x128xf32, #tpu.memory_space<vmem>>, vector<1x16x128xf32>,
    %42 = arith.addf %38, %18 : vector<16x128xf32>
    %cst_23 = arith.constant 0.999899983 : f32
    %43 = vector.broadcast %cst_23 : f32 to vector<16x128xf32>
    %44 = arith.cmpf oge, %42, %43 : vector<16x128xf32>
    %45 = arith.extui %44 : vector<16x128xi1> to vector<16x128xi32>
    %46 = arith.sitofp %45 : vector<16x128xi32> to vector<16x128xf32>
    %cst_24 = arith.constant 0.999899983 : f32
    %47 = vector.broadcast %cst_24 : f32 to vector<16x128xf32>
    %48 = arith.mulf %46, %47 : vector<16x128xf32>
    %49 = arith.subf %42, %48 : vector<16x128xf32>
    %c2_25 = arith.constant 2 : index
    %c0_26 = arith.constant 0 : index
    %c0_27 = arith.constant 0 : index
    %50 = vector.load %arg2[%c2_25, %c0_26, %c0_27] : memref<6x16x128xf32, #tpu.memory_space<vmem>>, vector<1x16x128xf32>
    %51 = vector.shape_cast %50 : vector<1x16x128xf32> to vector<16x128xf32>
    %52 = vector.shape_cast %46 : vector<16x128xf32> to vector<1x16x128xf32>
    tpu.vector_store %arg2[%c2_25, %c0_26, %c0_27], %52 {strides = array<i32>} : memref<6x16x128xf32, #tpu.memory_space<vmem>>, vector<1x16x128xf32>,
    %53 = arith.addf %49, %18 : vector<16x128xf32>
    %cst_28 = arith.constant 0.999899983 : f32
    %54 = vector.broadcast %cst_28 : f32 to vector<16x128xf32>
    %55 = arith.cmpf oge, %53, %54 : vector<16x128xf32>
    %56 = arith.extui %55 : vector<16x128xi1> to vector<16x128xi32>
    %57 = arith.sitofp %56 : vector<16x128xi32> to vector<16x128xf32>
    %cst_29 = arith.constant 0.999899983 : f32
    %58 = vector.broadcast %cst_29 : f32 to vector<16x128xf32>
    %59 = arith.mulf %57, %58 : vector<16x128xf32>
    %60 = arith.subf %53, %59 : vector<16x128xf32>
    %c3_30 = arith.constant 3 : index
    %c0_31 = arith.constant 0 : index
    %c0_32 = arith.constant 0 : index
    %61 = vector.load %arg2[%c3_30, %c0_31, %c0_32] : memref<6x16x128xf32, #tpu.memory_space<vmem>>, vector<1x16x128xf32>
    %62 = vector.shape_cast %61 : vector<1x16x128xf32> to vector<16x128xf32>
    %63 = vector.shape_cast %57 : vector<16x128xf32> to vector<1x16x128xf32>
    tpu.vector_store %arg2[%c3_30, %c0_31, %c0_32], %63 {strides = array<i32>} : memref<6x16x128xf32, #tpu.memory_space<vmem>>, vector<1x16x128xf32>,
    %64 = arith.addf %60, %18 : vector<16x128xf32>
    %cst_33 = arith.constant 0.999899983 : f32
    %65 = vector.broadcast %cst_33 : f32 to vector<16x128xf32>
    %66 = arith.cmpf oge, %64, %65 : vector<16x128xf32>
    %67 = arith.extui %66 : vector<16x128xi1> to vector<16x128xi32>
    %68 = arith.sitofp %67 : vector<16x128xi32> to vector<16x128xf32>
    %cst_34 = arith.constant 0.999899983 : f32
    %69 = vector.broadcast %cst_34 : f32 to vector<16x128xf32>
    %70 = arith.mulf %68, %69 : vector<16x128xf32>
    %71 = arith.subf %64, %70 : vector<16x128xf32>
    %c4_35 = arith.constant 4 : index
    %c0_36 = arith.constant 0 : index
    %c0_37 = arith.constant 0 : index
    %72 = vector.load %arg2[%c4_35, %c0_36, %c0_37] : memref<6x16x128xf32, #tpu.memory_space<vmem>>, vector<1x16x128xf32>
    %73 = vector.shape_cast %72 : vector<1x16x128xf32> to vector<16x128xf32>
    %74 = vector.shape_cast %68 : vector<16x128xf32> to vector<1x16x128xf32>
    tpu.vector_store %arg2[%c4_35, %c0_36, %c0_37], %74 {strides = array<i32>} : memref<6x16x128xf32, #tpu.memory_space<vmem>>, vector<1x16x128xf32>,
    %75 = arith.addf %71, %18 : vector<16x128xf32>
    %cst_38 = arith.constant 0.999899983 : f32
    %76 = vector.broadcast %cst_38 : f32 to vector<16x128xf32>
    %77 = arith.cmpf oge, %75, %76 : vector<16x128xf32>
    %78 = arith.extui %77 : vector<16x128xi1> to vector<16x128xi32>
    %79 = arith.sitofp %78 : vector<16x128xi32> to vector<16x128xf32>
    %c5_39 = arith.constant 5 : index
    %c0_40 = arith.constant 0 : index
    %c0_41 = arith.constant 0 : index
    %80 = vector.load %arg2[%c5_39, %c0_40, %c0_41] : memref<6x16x128xf32, #tpu.memory_space<vmem>>, vector<1x16x128xf32>
    %81 = vector.shape_cast %80 : vector<1x16x128xf32> to vector<16x128xf32>
    %82 = vector.shape_cast %79 : vector<16x128xf32> to vector<1x16x128xf32>
    tpu.vector_store %arg2[%c5_39, %c0_40, %c0_41], %82 {strides = array<i32>} : memref<6x16x128xf32, #tpu.memory_space<vmem>>, vector<1x16x128xf32>,
    return
  }
  func.func @transform_0(%arg0: i32) -> (i32, i32, i32) {
    %c0_i32 = arith.constant 0 : i32
    %c0_i32_0 = arith.constant 0 : i32
    %c0_i32_1 = arith.constant 0 : i32
    return %c0_i32, %arg0, %c0_i32_0 : i32, i32, i32
  }
  func.func @transform_1(%arg0: i32) -> (i32, i32, i32) {
    %c0_i32 = arith.constant 0 : i32
    %c0_i32_0 = arith.constant 0 : i32
    %c0_i32_1 = arith.constant 0 : i32
    return %c0_i32, %arg0, %c0_i32_0 : i32, i32, i32
  }
}

</mosaic_0001>

<bundles_post_ra>
// kernel: tpu_custom_call.1
= control target key start
LH: loop header
LB: loop body
LE: loop exit
PB: predicated region body
PF: predicated region fallthrough
CT: control target
= control target key end

     0   :  { %6 = vsyncpa [#allocation3], 0  ;;  %s275_s0 = inlined_call_operand.hbm [shape: f32[6,16,128], index: 0, kind: input, shape index: {}]   ;;  %s276_s1 = inlined_call_operand.hbm [shape: f32[6,16,128], index: 1, kind: output, shape index: {}]  }
   0x1   :  { %7 = vsyncpa [#allocation4], 0  ;;  %s12_s8 = sshll.u32 %s275_s0, 4  ;;  %s227_s9 = smov [#allocation2]   ;;  %s13_s8 = int_to_ptr.hbm [resolvable:$true] %s12_s8 }
   0x2   :  { %s14_s10 = sshll.u32 %s227_s9, 4  ;;  %s228_s11 = smov 128   ;;  %s15_s10 = int_to_ptr.vmem [resolvable:$true] %s14_s10 }
   0x3   :  { %s229_s12 = smov 8  }
   0x4   :  { %20 = dma.hbm_to_vmem [thread:$0]  %s13_s8, 1536, %s15_s10, [#allocation3], %s228_s11, %s228_s11, %s229_s12  }
   0x5   :  { %223 = dma.done.wait [#allocation3], 1536  }
   0x6   :  { %224 = vsyncadd [#allocation3], 4294965760  ;;  %v25_v0 = vld [vmem:[#allocation2] sm:$0xff]  ;;  %v28_v1 = vld [vmem:[#allocation2 + $0x10] sm:$0xff]  ;;  %v230_v24 = vmov 0.0   ;;  %s231_s0 = smov [#allocation5]  }
   0x7   :  { %v33_v2 = vld [vmem:[#allocation2 + $0x20] sm:$0xff]  ;;  %v30_v3 = vadd.f32 %v28_v1, %v25_v0  ;;  %v38_v4 = vld [vmem:[#allocation2 + $0x30] sm:$0xff]  ;;  %v26_v5 = vld [vmem:[#allocation2 + $0x8] sm:$0xff]  ;;  %s143_s13 = sshll.u32 %s231_s0, 4  ;;  %s145_s16 = sshll.u32 %s276_s1, 4  ;;  %s144_s13 = int_to_ptr.vmem [resolvable:$true] %s143_s13  ;;  %s146_s16 = int_to_ptr.hbm [resolvable:$true] %s145_s16 }
   0x8   :  { %v29_v6 = vld [vmem:[#allocation2 + $0x18] sm:$0xff]  ;;  %v34_v7 = vld [vmem:[#allocation2 + $0x28] sm:$0xff]  ;;  %v43_v10 = vld [vmem:[#allocation2 + $0x40] sm:$0xff] }
   0x9   :  { %v35_v8 = vadd.f32 %v33_v2, %v30_v3  ;;  %v31_v9 = vadd.f32 %v29_v6, %v26_v5  ;;  %v39_v11 = vld [vmem:[#allocation2 + $0x38] sm:$0xff]  ;;  %v48_v14 = vld [vmem:[#allocation2 + $0x50] sm:$0xff]  ;;  %v44_v15 = vld [vmem:[#allocation2 + $0x48] sm:$0xff] }
   0xa   :  { %v49_v18 = vld [vmem:[#allocation2 + $0x58] sm:$0xff] }
   0xb   :  { %v40_v12 = vadd.f32 %v38_v4, %v35_v8  ;;  %v36_v13 = vadd.f32 %v34_v7, %v31_v9 }
   0xd   :  { %v45_v16 = vadd.f32 %v43_v10, %v40_v12  ;;  %v41_v17 = vadd.f32 %v39_v11, %v36_v13 }
   0xf   :  { %v50_v19 = vadd.f32 %v48_v14, %v45_v16  ;;  %v46_v20 = vadd.f32 %v44_v15, %v41_v17 }
  0x11   :  { %v52_v21 = vmul.f32 0.16666667, %v50_v19  ;;  %v51_v22 = vadd.f32 %v49_v18, %v46_v20 }
  0x13   :  { %vm56_vm0 = vcmp.ge.f32.partialorder %v52_v21, 0.9999  ;;  %v248_v23 = vmul.f32 0.16666667, %v51_v22 }
  0x14   :  { %v158_v25 = vsel %vm56_vm0, 1.0, %v230_v24 }
  0x15   :  { %v62_v26 = vmul.f32 0.9999, %v158_v25  ;;  %66 = vst [vmem:[#allocation5] sm:$0xff] %v158_v25  ;;  %vm57_vm1 = vcmp.ge.f32.partialorder %v248_v23, 0.9999 }
  0x16   :  { %v159_v27 = vsel %vm57_vm1, 1.0, %v230_v24 }
  0x17   :  { %v64_v28 = vsub.f32 %v52_v21, %v62_v26  ;;  %v63_v29 = vmul.f32 0.9999, %v159_v27  ;;  %67 = vst [vmem:[#allocation5 + $0x8] sm:$0xff] %v159_v27 }
  0x19   :  { %v65_v30 = vsub.f32 %v248_v23, %v63_v29  ;;  %v68_v31 = vadd.f32 %v64_v28, %v52_v21 }
  0x1b   :  { %vm70_vm2 = vcmp.ge.f32.partialorder %v68_v31, 0.9999  ;;  %v69_v32 = vadd.f32 %v65_v30, %v248_v23 }
  0x1c   :  { %v160_v33 = vsel %vm70_vm2, 1.0, %v230_v24 }
  0x1d   :  { %v76_v34 = vmul.f32 0.9999, %v160_v33  ;;  %81 = vst [vmem:[#allocation5 + $0x10] sm:$0xff] %v160_v33  ;;  %vm71_vm3 = vcmp.ge.f32.partialorder %v69_v32, 0.9999 }
  0x1e   :  { %v161_v35 = vsel %vm71_vm3, 1.0, %v230_v24 }
  0x1f   :  { %v78_v36 = vsub.f32 %v68_v31, %v76_v34  ;;  %v77_v37 = vmul.f32 0.9999, %v161_v35  ;;  %82 = vst [vmem:[#allocation5 + $0x18] sm:$0xff] %v161_v35 }
  0x21   :  { %v79_v38 = vsub.f32 %v69_v32, %v77_v37  ;;  %v83_v39 = vadd.f32 %v78_v36, %v52_v21 }
  0x23   :  { %vm85_vm4 = vcmp.ge.f32.partialorder %v83_v39, 0.9999  ;;  %v84_v40 = vadd.f32 %v79_v38, %v248_v23 }
  0x24   :  { %v162_v41 = vsel %vm85_vm4, 1.0, %v230_v24 }
  0x25   :  { %v91_v42 = vmul.f32 0.9999, %v162_v41  ;;  %96 = vst [vmem:[#allocation5 + $0x20] sm:$0xff] %v162_v41  ;;  %vm86_vm5 = vcmp.ge.f32.partialorder %v84_v40, 0.9999 }
  0x26   :  { %v163_v43 = vsel %vm86_vm5, 1.0, %v230_v24 }
  0x27   :  { %v93_v44 = vsub.f32 %v83_v39, %v91_v42  ;;  %v92_v45 = vmul.f32 0.9999, %v163_v43  ;;  %97 = vst [vmem:[#allocation5 + $0x28] sm:$0xff] %v163_v43 }
  0x29   :  { %v94_v46 = vsub.f32 %v84_v40, %v92_v45  ;;  %v98_v47 = vadd.f32 %v93_v44, %v52_v21 }
  0x2b   :  { %vm100_vm6 = vcmp.ge.f32.partialorder %v98_v47, 0.9999  ;;  %v99_v48 = vadd.f32 %v94_v46, %v248_v23 }
  0x2c   :  { %v164_v49 = vsel %vm100_vm6, 1.0, %v230_v24 }
  0x2d   :  { %v106_v50 = vmul.f32 0.9999, %v164_v49  ;;  %111 = vst [vmem:[#allocation5 + $0x30] sm:$0xff] %v164_v49  ;;  %vm101_vm7 = vcmp.ge.f32.partialorder %v99_v48, 0.9999 }
  0x2e   :  { %v165_v51 = vsel %vm101_vm7, 1.0, %v230_v24 }
  0x2f   :  { %v108_v52 = vsub.f32 %v98_v47, %v106_v50  ;;  %v107_v53 = vmul.f32 0.9999, %v165_v51  ;;  %112 = vst [vmem:[#allocation5 + $0x38] sm:$0xff] %v165_v51 }
  0x31   :  { %v109_v54 = vsub.f32 %v99_v48, %v107_v53  ;;  %v113_v55 = vadd.f32 %v108_v52, %v52_v21 }
  0x33   :  { %vm115_vm8 = vcmp.ge.f32.partialorder %v113_v55, 0.9999  ;;  %v114_v56 = vadd.f32 %v109_v54, %v248_v23 }
  0x34   :  { %v166_v57 = vsel %vm115_vm8, 1.0, %v230_v24 }
  0x35   :  { %v121_v58 = vmul.f32 0.9999, %v166_v57  ;;  %126 = vst [vmem:[#allocation5 + $0x40] sm:$0xff] %v166_v57  ;;  %vm116_vm9 = vcmp.ge.f32.partialorder %v114_v56, 0.9999 }
  0x36   :  { %v167_v59 = vsel %vm116_vm9, 1.0, %v230_v24 }
  0x37   :  { %v123_v60 = vsub.f32 %v113_v55, %v121_v58  ;;  %v122_v61 = vmul.f32 0.9999, %v167_v59  ;;  %127 = vst [vmem:[#allocation5 + $0x48] sm:$0xff] %v167_v59 }
  0x39   :  { %v124_v62 = vsub.f32 %v114_v56, %v122_v61  ;;  %v128_v63 = vadd.f32 %v123_v60, %v52_v21 }
  0x3b   :  { %vm130_vm10 = vcmp.ge.f32.partialorder %v128_v63, 0.9999  ;;  %v129_v0 = vadd.f32 %v124_v62, %v248_v23 }
  0x3c   :  { %v168_v1 = vsel %vm130_vm10, 1.0, %v230_v24 }
  0x3d   :  { %137 = vst [vmem:[#allocation5 + $0x50] sm:$0xff] %v168_v1  ;;  %vm131_vm11 = vcmp.ge.f32.partialorder %v129_v0, 0.9999 }
  0x3e   :  { %v169_v2 = vsel %vm131_vm11, 1.0, %v230_v24 }
  0x3f   :  { %138 = vst [vmem:[#allocation5 + $0x58] sm:$0xff] %v169_v2 }
  0x40   :  { %151 = dma.vmem_to_hbm [thread:$0]  %s144_s13, 1536, %s146_s16, [#allocation4], %s228_s11, %s228_s11, %s229_s12  }
  0x41   :  { %225 = dma.done.wait [#allocation4], 1536  }
  0x42   :  { %226 = vsyncadd [#allocation4], 4294965760 }
  0x43   :  { %156 = vsyncpa [#allocation3], 1 }
  0x44   :  { %157 = vsyncpa [#allocation4], 1 }

</bundles_post_ra>
